<compile_context>
chip_gen: v7x
topology: tpu7x:2x2x1
jax: 0.10.0
libtpu: 0.0.40
codegen_flags: <defaults>
</compile_context>

<pallas_src>
import functools

import jax
import jax.numpy as jnp
from jax import lax
from jax.experimental import pallas as pl
from jax.experimental.pallas import tpu as pltpu

HIDDEN = 64

_VMEM_TILE_BUDGET = 20 * 1024 * 1024   # per-step tile budget (hidden act. dominates)
_VMEM_LIMIT_BYTES = 32 * 1024 * 1024   # scoped VMEM limit, safe on all generations


def _round_up(x, m):
    return ((x + m - 1) // m) * m


def _cdiv(a, b):
    return -(-a // b)


def _default_pack():
    """Batch elements packed per MXU column (block-diagonal fc1 weight).

    P = min(M_mxu/H, K_mxu/D): 4 for 256x256 MXUs (v6e/v7x), 2 for 128x128
    MXUs (v2..v5).  P=4 remains *correct* everywhere, so unknown chips
    default to 4.
    """
    try:
        kind = jax.devices()[0].device_kind.lower()
    except Exception:
        return 4
    return 4 if ("v6" in kind or "v7" in kind) else 2


def _critic_kernel(x_ref, w1_ref, b1_ref, w2_ref, b2_ref, o_ref):
    # x_ref : (TB2, P*D) f32   obs tile; each row packs P consecutive batch elems
    # w1_ref: (P*H, P*D) bf16  block-diagonal fc1 weight = kron(I_P, fc1.weight)
    # b1_ref: (P*H, 1)   f32   fc1.bias tiled P times (column)
    # w2_ref: (P*H, 1)   f32   fc2.weight tiled P times (column)
    # b2_ref: (1,)       f32   fc2.bias (SMEM scalar)
    # o_ref : (P, TB2)   f32   values; o[p, i] = value of batch element i*P + p
    p_pack = o_ref.shape[0]
    h_dim = w1_ref.shape[0] // p_pack

    # In-kernel bf16 cast of the only B-scaling stream (obs arrives native f32).
    xb = x_ref[...].astype(jnp.bfloat16)

    # fc1 on the MXU: contract x's last axis (K = P*D, M = P*H); the batch
    # stays on the lane axis of the result.  bf16 operands, f32 accumulation.
    h = lax.dot_general(
        w1_ref[...], xb,
        dimension_numbers=(((1,), (1,)), ((), ())),
        preferred_element_type=jnp.float32)                     # (P*H, TB2)

    # Bias + tanh in f32 on the VPU/EUP (v5e has no bf16 EUP).
    # TODO(synk): bf16 tanh on v6e/v7x once ~1e-2 tolerance is acceptable.
    h = jnp.tanh(h + b1_ref[...])

    # fc2 (64 -> 1): weight the rows, then reduce each 64-row sublane segment
    # with static slices (no reshape of the packed activation).  VPU/XLU only,
    # so the MXU stays dedicated to fc1.
    hw = h * w2_ref[...]
    parts = [
        jnp.sum(hw[p * h_dim:(p + 1) * h_dim, :], axis=0, keepdims=True)
        for p in range(p_pack)
    ]
    v = jnp.concatenate(parts, axis=0) + b2_ref[0]               # (P, TB2)
    o_ref[...] = v.astype(o_ref.dtype)


@functools.partial(jax.jit, static_argnames=("block_b", "pack"))
def critic_forward(obs, w1, b1, w2, b2, *, block_b=32768, pack=None):
    """Critic forward pass.

    obs: [B, D] f32; w1: [64, D]; b1: [64]; w2: [1, 64]; b2: [1]
    (PyTorch nn.Linear layouts).  Returns [B, 1] f32.
    """
    B, D = obs.shape
    H = w1.shape[0]
    P = pack if pack is not None else _default_pack()
    PD, PH = P * D, P * H

    # ---- tile selection (packed rows; 1 packed row == P batch elements) ----
    B2 = _cdiv(B, P)
    # Per-step VMEM: double-buffered f32 input + bf16 copies, (P*H, TB2) f32
    # hidden activation (+ temps), double-buffered output tile.
    bytes_per_row = (2 * PD * 4) + (2 * PD * 2) + (3 * PH * 4) + (2 * P * 4)
    weight_bytes = 2 * PH * PD * 2 + 4 * PH * 4
    row_budget = max(_VMEM_TILE_BUDGET - weight_bytes, 128 * bytes_per_row)
    tb2_vmem = max(128, (row_budget // bytes_per_row) // 128 * 128)
    tb2 = min(_round_up(_cdiv(block_b, P), 128), tb2_vmem)
    # >= 2 grid steps once the batch is big enough (megacore split on v7x);
    # also avoids gross padding for small / medium batches.
    tb2 = min(tb2, max(128, _round_up(_cdiv(B2, 2), 128)))

    B2_pad = _round_up(B2, tb2)
    B_pad = B2_pad * P
    grid = (B2_pad // tb2,)

    # Pack P batch elements per row.  When B is already a multiple of P*tb2
    # this is a pure bitcast (no HBM pass); otherwise only the alignment pad
    # touches memory.
    x2 = jnp.pad(obs, ((0, B_pad - B), (0, 0))).reshape(B2_pad, PD)

    # Tiny, VMEM-resident operands (constant index maps below).
    w1_bd = jnp.kron(jnp.eye(P, dtype=jnp.float32),
                     w1.astype(jnp.float32)).astype(jnp.bfloat16)   # (P*H, P*D)
    b1_t = jnp.tile(b1.astype(jnp.float32), P).reshape(PH, 1)        # (P*H, 1)
    w2_t = jnp.tile(w2.reshape(-1).astype(jnp.float32), P).reshape(PH, 1)
    b2_s = b2.reshape(1).astype(jnp.float32)                         # (1,)

    cost = pl.CostEstimate(
        flops=2 * B_pad * H * D + 3 * B_pad * H,
        transcendentals=B_pad * H,
        bytes_accessed=(x2.size * 4 + w1_bd.size * 2
                        + (b1_t.size + w2_t.size + b2_s.size) * 4
                        + P * B2_pad * 4),
    )

    out = pl.pallas_call(
        _critic_kernel,
        out_shape=jax.ShapeDtypeStruct((P, B2_pad), jnp.float32),
        grid=grid,
        in_specs=[
            pl.BlockSpec((tb2, PD), lambda i: (i, 0)),            # obs (streamed)
            pl.BlockSpec((PH, PD), lambda i: (0, 0)),             # fc1 weight (resident)
            pl.BlockSpec((PH, 1), lambda i: (0, 0)),              # fc1 bias (resident)
            pl.BlockSpec((PH, 1), lambda i: (0, 0)),              # fc2 weight (resident)
            pl.BlockSpec(memory_space=pltpu.MemorySpace.SMEM),    # fc2 bias scalar
        ],
        out_specs=pl.BlockSpec((P, tb2), lambda i: (0, i)),       # lane-dense values
        compiler_params=pltpu.CompilerParams(
            dimension_semantics=("parallel",),
            vmem_limit_bytes=_VMEM_LIMIT_BYTES,
        ),
        cost_estimate=cost,
    )(x2, w1_bd, b1_t, w2_t, b2_s)

    # Un-pack: out[p, i] is the value of original batch element i*P + p.
    return out.T.reshape(-1)[:B].reshape(B, 1)


def init_critic_params(key, observation_dim):
    """PyTorch nn.Linear default init (U[-1/sqrt(fan_in), +1/sqrt(fan_in)])."""
    k1, k2, k3, k4 = jax.random.split(key, 4)
    bound1 = 1.0 / jnp.sqrt(observation_dim)
    bound2 = 1.0 / jnp.sqrt(HIDDEN)
    w1 = jax.random.uniform(k1, (HIDDEN, observation_dim), jnp.float32, -bound1, bound1)
    b1 = jax.random.uniform(k2, (HIDDEN,), jnp.float32, -bound1, bound1)
    w2 = jax.random.uniform(k3, (1, HIDDEN), jnp.float32, -bound2, bound2)
    b2 = jax.random.uniform(k4, (1,), jnp.float32, -bound2, bound2)
    return w1, b1, w2, b2


if __name__ == "__main__":
    key = jax.random.PRNGKey(0)
    k_obs, k_params = jax.random.split(key)

    observation_dim = 16
    w1, b1, w2, b2 = init_critic_params(k_params, observation_dim)

    def reference(o):
        # Mirror the kernel's bf16 rounding of the fc1 operands (f32 accumulation).
        o_bf = o.astype(jnp.bfloat16).astype(jnp.float32)
        w1_bf = w1.astype(jnp.bfloat16).astype(jnp.float32)
        pre = lax.dot_general(o_bf, w1_bf, (((1,), (1,)), ((), ())),
                              precision=lax.Precision.HIGHEST)
        h = jnp.tanh(pre + b1[None, :])
        return (h * w2.reshape(1, -1)).sum(axis=1, keepdims=True) + b2[None, :]

    # Exercise: tiny batch (single grid step), medium batch (multi-step grid /
    # megacore split), and an explicitly smaller block_b.
    for batch, blk in ((200, 32768), (3000, 32768), (8192, 4096)):
        obs = jax.random.normal(jax.random.fold_in(k_obs, batch),
                                (batch, observation_dim), dtype=jnp.float32)
        value = critic_forward(obs, w1, b1, w2, b2, block_b=blk)
        value = jax.block_until_ready(value)
        ref = reference(obs)
        assert value.shape == (batch, 1)
        err = float(jnp.max(jnp.abs(value - ref)))
        assert jnp.allclose(value, ref, atol=2e-3, rtol=2e-3), err

    print("KERNEL_OK")
</pallas_src>

<mosaic_0001>
module attributes {stable_mosaic.version = 11 : i64} {
  func.func @_critic_kernel(%arg0: i32, %arg1: memref<128x32xf32, #tpu.memory_space<vmem>>, %arg2: memref<128x32xbf16, #tpu.memory_space<vmem>>, %arg3: memref<128x1xf32, #tpu.memory_space<vmem>>, %arg4: memref<128x1xf32, #tpu.memory_space<vmem>>, %arg5: memref<1xf32, #tpu.memory_space<smem>>, %arg6: memref<2x128xf32, #tpu.memory_space<vmem>>) attributes {dimension_semantics = [#tpu.dimension_semantics<parallel>], iteration_bounds = array<i64: 1>, scalar_prefetch = 0 : i64, scratch_operands = 0 : i64, tpu.core_type = #tpu.core_type<tc>, window_params = [{transform_indices = @transform_0, window_bounds = array<i64: 128, 32>}, {pipeline_mode = #tpu.pipeline_mode<synchronous>, transform_indices = @transform_1, window_bounds = array<i64: 128, 32>}, {pipeline_mode = #tpu.pipeline_mode<synchronous>, transform_indices = @transform_2, window_bounds = array<i64: 128, 1>}, {pipeline_mode = #tpu.pipeline_mode<synchronous>, transform_indices = @transform_3, window_bounds = array<i64: 128, 1>}, {transform_indices = @transform_4, window_bounds = array<i64: 1>}, {transform_indices = @transform_5, window_bounds = array<i64: 2, 128>}]} {
    %c0 = arith.constant 0 : index
    %c0_0 = arith.constant 0 : index
    %0 = vector.load %arg1[%c0, %c0_0] : memref<128x32xf32, #tpu.memory_space<vmem>>, vector<128x32xf32>
    %1 = arith.truncf %0 : vector<128x32xf32> to vector<128x32xbf16>
    %c0_1 = arith.constant 0 : index
    %c0_2 = arith.constant 0 : index
    %2 = vector.load %arg2[%c0_1, %c0_2] : memref<128x32xbf16, #tpu.memory_space<vmem>>, vector<128x32xbf16>
    %cst = arith.constant dense<0.000000e+00> : vector<128x128xf32>
    %3 = tpu.matmul %2, %1, %cst {dimension_numbers = #tpu.dot_dimension_numbers<[1], [1], [0], [0], [0, 0, 1, 0], [], []>} : vector<128x32xbf16>, vector<128x32xbf16>, vector<128x128xf32> -> vector<128x128xf32>
    %c0_3 = arith.constant 0 : index
    %c0_4 = arith.constant 0 : index
    %4 = vector.load %arg3[%c0_3, %c0_4] : memref<128x1xf32, #tpu.memory_space<vmem>>, vector<128x1xf32>
    %5 = vector.broadcast %4 : vector<128x1xf32> to vector<128x128xf32>
    %6 = arith.addf %3, %5 : vector<128x128xf32>
    %7 = math.tanh %6 : vector<128x128xf32>
    %c0_5 = arith.constant 0 : index
    %c0_6 = arith.constant 0 : index
    %8 = vector.load %arg4[%c0_5, %c0_6] : memref<128x1xf32, #tpu.memory_space<vmem>>, vector<128x1xf32>
    %9 = vector.broadcast %8 : vector<128x1xf32> to vector<128x128xf32>
    %10 = arith.mulf %7, %9 : vector<128x128xf32>
    %11 = vector.extract_strided_slice %10 {offsets = [0, 0], sizes = [64, 128], strides = [1, 1]} : vector<128x128xf32> to vector<64x128xf32>
    %cst_7 = arith.constant dense<0.000000e+00> : vector<128xf32>
    %12 = vector.multi_reduction <add>, %11, %cst_7 [0] : vector<64x128xf32> to vector<128xf32>
    %13 = vector.shape_cast %12 : vector<128xf32> to vector<1x128xf32>
    %14 = vector.extract_strided_slice %10 {offsets = [64, 0], sizes = [64, 128], strides = [1, 1]} : vector<128x128xf32> to vector<64x128xf32>
    %cst_8 = arith.constant dense<0.000000e+00> : vector<128xf32>
    %15 = vector.multi_reduction <add>, %14, %cst_8 [0] : vector<64x128xf32> to vector<128xf32>
    %16 = vector.shape_cast %15 : vector<128xf32> to vector<1x128xf32>
    %17 = tpu.concatenate %13, %16 in 0 : vector<1x128xf32>, vector<1x128xf32> -> vector<2x128xf32>
    %c0_9 = arith.constant 0 : index
    %18 = memref.load %arg5[%c0_9] : memref<1xf32, #tpu.memory_space<smem>>
    %19 = vector.broadcast %18 : f32 to vector<2x128xf32>
    %20 = arith.addf %17, %19 : vector<2x128xf32>
    %c0_10 = arith.constant 0 : index
    %c0_11 = arith.constant 0 : index
    %21 = vector.load %arg6[%c0_10, %c0_11] : memref<2x128xf32, #tpu.memory_space<vmem>>, vector<2x128xf32>
    tpu.vector_store %arg6[%c0_10, %c0_11], %20 {strides = array<i32>} : memref<2x128xf32, #tpu.memory_space<vmem>>, vector<2x128xf32>,
    return
  }
  func.func @transform_0(%arg0: i32) -> (i32, i32) {
    %c0_i32 = arith.constant 0 : i32
    %c0_i32_0 = arith.constant 0 : i32
    return %arg0, %c0_i32 : i32, i32
  }
  func.func @transform_1(%arg0: i32) -> (i32, i32) {
    %c0_i32 = arith.constant 0 : i32
    %c0_i32_0 = arith.constant 0 : i32
    %c0_i32_1 = arith.constant 0 : i32
    return %c0_i32, %c0_i32_0 : i32, i32
  }
  func.func @transform_2(%arg0: i32) -> (i32, i32) {
    %c0_i32 = arith.constant 0 : i32
    %c0_i32_0 = arith.constant 0 : i32
    %c0_i32_1 = arith.constant 0 : i32
    return %c0_i32, %c0_i32_0 : i32, i32
  }
  func.func @transform_3(%arg0: i32) -> (i32, i32) {
    %c0_i32 = arith.constant 0 : i32
    %c0_i32_0 = arith.constant 0 : i32
    %c0_i32_1 = arith.constant 0 : i32
    return %c0_i32, %c0_i32_0 : i32, i32
  }
  func.func @transform_4(%arg0: i32) -> i32 {
    %c0_i32 = arith.constant 0 : i32
    %c0_i32_0 = arith.constant 0 : i32
    return %c0_i32 : i32
  }
  func.func @transform_5(%arg0: i32) -> (i32, i32) {
    %c0_i32 = arith.constant 0 : i32
    %c0_i32_0 = arith.constant 0 : i32
    return %c0_i32, %arg0 : i32, i32
  }
}

</mosaic_0001>

<bundles_post_ra>
// kernel: tile.12
= control target key start
LH: loop header
LB: loop body
LE: loop exit
PB: predicated region body
PF: predicated region fallthrough
CT: control target
= control target key end

     0   :  { %s22_s0 = inlined_call_operand.vmem [shape: f32[64], index: 0, kind: input, shape index: {}]   ;;  %s23_s1 = inlined_call_operand.vmem [shape: f32[2,64], index: 1, kind: output, shape index: {}]  }
   0x1   :  { %v4_v0 = vld [vmem:[%s22_s0] ss:$0 sm:$0xff] }
   0x2   :  { %5 = vst [vmem:[%s23_s1] sm:$0x3] %v4_v0 }

// kernel: tile.0
= control target key start
LH: loop header
LB: loop body
LE: loop exit
PB: predicated region body
PF: predicated region fallthrough
CT: control target
= control target key end

     0   :  { %s706_s8 = smov 125   ;;  %s707_s9 = smov 126   ;;  %vm7_vm0 = vcmask 7168   ;;  %s1293_s0 = inlined_call_operand.vmem [shape: f32[2,64], index: 0, kind: input, shape index: {}]   ;;  %s1294_s1 = inlined_call_operand.vmem [shape: f32[128,1], index: 1, kind: output, shape index: {}]  }
   0x1   :  { %v4_v0 = vld [vmem:[%s1293_s0] sm:$0x3]  ;;  %s705_s0 = smov 127   ;;  %s708_s10 = smov 124  }
   0x2   :  { %5 = vst [vmem:[#allocation0] sm:$0x3] %v4_v0  ;;  %s709_s11 = smov 123   ;;  %s710_s12 = smov 122  }
   0x3   :  { %s711_s13 = smov 121   ;;  %s712_s14 = smov 120  }
   0x4   :  { %s713_s15 = smov 119   ;;  %s714_s16 = smov 118  }
   0x5   :  { %s715_s17 = smov 117   ;;  %s716_s18 = smov 116  }
   0x6   :  { %s717_s19 = smov 115   ;;  %s718_s20 = smov 114  }
   0x7   :  { %s719_s21 = smov 113   ;;  %s720_s22 = smov 112  }
   0x8   :  { %s721_s23 = smov 111   ;;  %s722_s24 = smov 110  }
   0x9   :  { %v11_v1 = vld [vmem:[#allocation0] sm:$0x3]   ;;  %s723_s25 = smov 109   ;;  %s724_s26 = smov 108  }
   0xa   :  { %v27_v2 = vld [vmem:[#allocation0] sm:$0x3]   ;;  %12 = vrot.lane.b32.xlu0 %v11_v1, %s705_s0  ;;  %s725_s27 = smov 107   ;;  %s726_s28 = smov 106  }
   0xb   :  { %28 = vrot.lane.b32.xlu1 %v27_v2, %s706_s8  ;;  %v19_v3 = vld [vmem:[#allocation0] sm:$0x3]   ;;  %s727_s29 = smov 105   ;;  %s728_s30 = smov 104  }
   0xc   :  { %v35_v4 = vld [vmem:[#allocation0] sm:$0x3]   ;;  %s729_s2 = smov 103   ;;  %s730_s3 = smov 102  }
   0xd   :  { %v43_v5 = vld [vmem:[#allocation0] sm:$0x3]   ;;  %s731_s4 = smov 101   ;;  %s732_s5 = smov 100  }
   0xe   :  { %20 = vrot.lane.b32.xlu0 %v19_v3, %s707_s9  ;;  %v51_v6 = vld [vmem:[#allocation0] sm:$0x3]   ;;  %s733_s6 = smov 99   ;;  %s734_s7 = smov 98  }
   0xf   :  { %36 = vrot.lane.b32.xlu1 %v35_v4, %s708_s10  ;;  %v59_v7 = vld [vmem:[#allocation0] sm:$0x3]   ;;  %s735_s0 = smov 97   ;;  %s736_s8 = smov 96  }
  0x10   :  { %v67_v8 = vld [vmem:[#allocation0] sm:$0x3]   ;;  %s737_s9 = smov 95   ;;  %s738_s10 = smov 94  }
  0x11   :  { %v75_v9 = vld [vmem:[#allocation0] sm:$0x3]  }
  0x12   :  { %44 = vrot.lane.b32.xlu0 %v43_v5, %s709_s11  ;;  %v83_v10 = vld [vmem:[#allocation0] sm:$0x3]   ;;  %s739_s11 = smov 93  }
  0x13   :  { %52 = vrot.lane.b32.xlu1 %v51_v6, %s710_s12  ;;  %v91_v11 = vld [vmem:[#allocation0] sm:$0x3]   ;;  %s740_s12 = smov 92  }
  0x14   :  { %v99_v12 = vld [vmem:[#allocation0] sm:$0x3]  }
  0x15   :  { %v107_v13 = vld [vmem:[#allocation0] sm:$0x3]  }
  0x16   :  { %60 = vrot.lane.b32.xlu0 %v59_v7, %s711_s13  ;;  %v115_v14 = vld [vmem:[#allocation0] sm:$0x3]   ;;  %s741_s13 = smov 91  }
  0x17   :  { %68 = vrot.lane.b32.xlu1 %v67_v8, %s712_s14  ;;  %v123_v15 = vld [vmem:[#allocation0] sm:$0x3]   ;;  %s742_s14 = smov 90  }
  0x18   :  { %v131_v16 = vld [vmem:[#allocation0] sm:$0x3]  }
  0x19   :  { %v139_v17 = vld [vmem:[#allocation0] sm:$0x3]  }
  0x1a   :  { %76 = vrot.lane.b32.xlu0 %v75_v9, %s713_s15  ;;  %v147_v18 = vld [vmem:[#allocation0] sm:$0x3]   ;;  %s743_s15 = smov 89  }
  0x1b   :  { %84 = vrot.lane.b32.xlu1 %v83_v10, %s714_s16  ;;  %v155_v19 = vld [vmem:[#allocation0] sm:$0x3]   ;;  %s744_s16 = smov 88  }
  0x1c   :  { %v163_v20 = vld [vmem:[#allocation0] sm:$0x3]  }
  0x1d   :  { %v171_v21 = vld [vmem:[#allocation0] sm:$0x3]  }
  0x1e   :  { %92 = vrot.lane.b32.xlu0 %v91_v11, %s715_s17  ;;  %v179_v22 = vld [vmem:[#allocation0] sm:$0x3]   ;;  %s745_s17 = smov 87  }
  0x1f   :  { %100 = vrot.lane.b32.xlu1 %v99_v12, %s716_s18  ;;  %v187_v23 = vld [vmem:[#allocation0] sm:$0x3]   ;;  %s746_s18 = smov 86  }
  0x20   :  { %v195_v24 = vld [vmem:[#allocation0] sm:$0x3]  }
  0x21   :  { %v203_v25 = vld [vmem:[#allocation0] sm:$0x3]  }
  0x22   :  { %108 = vrot.lane.b32.xlu0 %v107_v13, %s717_s19  ;;  %v211_v26 = vld [vmem:[#allocation0] sm:$0x3]   ;;  %s747_s19 = smov 85  }
  0x23   :  { %116 = vrot.lane.b32.xlu1 %v115_v14, %s718_s20  ;;  %v219_v27 = vld [vmem:[#allocation0] sm:$0x3]   ;;  %s748_s20 = smov 84  }
  0x24   :  { %v227_v28 = vld [vmem:[#allocation0] sm:$0x3]  }
  0x25   :  { %v235_v29 = vld [vmem:[#allocation0] sm:$0x3]  }
  0x26   :  { %124 = vrot.lane.b32.xlu0 %v123_v15, %s719_s21  ;;  %v243_v30 = vld [vmem:[#allocation0] sm:$0x3]   ;;  %s749_s21 = smov 83  }
  0x27   :  { %132 = vrot.lane.b32.xlu1 %v131_v16, %s720_s22  ;;  %v251_v31 = vld [vmem:[#allocation0] sm:$0x3]   ;;  %s750_s22 = smov 82  }
  0x28   :  { %v259_v32 = vld [vmem:[#allocation0] sm:$0x3]  }
  0x29   :  { %v267_v33 = vld [vmem:[#allocation0] sm:$0x3]  }
  0x2a   :  { %140 = vrot.lane.b32.xlu0 %v139_v17, %s721_s23  ;;  %v275_v34 = vld [vmem:[#allocation0] sm:$0x3]   ;;  %s751_s23 = smov 81  }
  0x2b   :  { %148 = vrot.lane.b32.xlu1 %v147_v18, %s722_s24  ;;  %v283_v35 = vld [vmem:[#allocation0] sm:$0x3]   ;;  %s752_s24 = smov 80  }
  0x2c   :  { %v291_v36 = vld [vmem:[#allocation0] sm:$0x3]  }
  0x2d   :  { %v299_v37 = vld [vmem:[#allocation0] sm:$0x3]  }
  0x2e   :  { %156 = vrot.lane.b32.xlu0 %v155_v19, %s723_s25  ;;  %v307_v38 = vld [vmem:[#allocation0] sm:$0x3]   ;;  %s753_s25 = smov 79  }
  0x2f   :  { %164 = vrot.lane.b32.xlu1 %v163_v20, %s724_s26  ;;  %v315_v39 = vld [vmem:[#allocation0] sm:$0x3]   ;;  %s754_s26 = smov 78  }
  0x30   :  { %v323_v40 = vld [vmem:[#allocation0] sm:$0x3]  }
  0x31   :  { %v331_v41 = vld [vmem:[#allocation0] sm:$0x3]  }
  0x32   :  { %172 = vrot.lane.b32.xlu0 %v171_v21, %s725_s27  ;;  %v339_v42 = vld [vmem:[#allocation0] sm:$0x3]   ;;  %s755_s27 = smov 77  }
  0x33   :  { %180 = vrot.lane.b32.xlu1 %v179_v22, %s726_s28  ;;  %v347_v43 = vld [vmem:[#allocation0] sm:$0x3]   ;;  %s756_s28 = smov 76  }
  0x34   :  { %v355_v44 = vld [vmem:[#allocation0] sm:$0x3]  }
  0x35   :  { %v363_v45 = vld [vmem:[#allocation0] sm:$0x3]  }
  0x36   :  { %188 = vrot.lane.b32.xlu0 %v187_v23, %s727_s29  ;;  %v371_v46 = vld [vmem:[#allocation0] sm:$0x3]   ;;  %s757_s29 = smov 75  }
  0x37   :  { %196 = vrot.lane.b32.xlu1 %v195_v24, %s728_s30  ;;  %v379_v47 = vld [vmem:[#allocation0] sm:$0x3]   ;;  %s758_s30 = smov 74  }
  0x38   :  { %v387_v48 = vld [vmem:[#allocation0] sm:$0x3]  }
  0x39   :  { %v395_v49 = vld [vmem:[#allocation0] sm:$0x3]  }
  0x3a   :  { %204 = vrot.lane.b32.xlu0 %v203_v25, %s729_s2  ;;  %v403_v50 = vld [vmem:[#allocation0] sm:$0x3]   ;;  %s759_s2 = smov 73  }
  0x3b   :  { %212 = vrot.lane.b32.xlu1 %v211_v26, %s730_s3  ;;  %v411_v51 = vld [vmem:[#allocation0] sm:$0x3]   ;;  %s760_s3 = smov 72  }
  0x3c   :  { %v419_v52 = vld [vmem:[#allocation0] sm:$0x3]  }
  0x3d   :  { %v427_v53 = vld [vmem:[#allocation0] sm:$0x3]  }
  0x3e   :  { %220 = vrot.lane.b32.xlu0 %v219_v27, %s731_s4  ;;  %v435_v54 = vld [vmem:[#allocation0] sm:$0x3]  }
  0x3f   :  { %228 = vrot.lane.b32.xlu1 %v227_v28, %s732_s5  ;;  %v443_v55 = vld [vmem:[#allocation0] sm:$0x3]  }
  0x40   :  { %v451_v56 = vld [vmem:[#allocation0] sm:$0x3]  }
  0x41   :  { %v459_v57 = vld [vmem:[#allocation0] sm:$0x3]  }
  0x42   :  { %236 = vrot.lane.b32.xlu0 %v235_v29, %s733_s6  ;;  %v467_v58 = vld [vmem:[#allocation0] sm:$0x3]  }
  0x43   :  { %244 = vrot.lane.b32.xlu1 %v243_v30, %s734_s7  ;;  %v6_v59 = vld [vmem:[#allocation0] sm:$0x3]  }
  0x44   :  { %8 = vst.msk [vmem:[%s1294_s1] sm:$0x1] %vm7_vm0, %v6_v59   ;;  %515 = vst.msk [vmem:[%s1294_s1 + $0x3f] sm:$0x2] %vm7_vm0, %v6_v59   ;;  %v475_v60 = vld [vmem:[#allocation0] sm:$0x3]  }
  0x45   :  { %v483_v61 = vld [vmem:[#allocation0] sm:$0x3]  }
  0x46   :  { %252 = vrot.lane.b32.xlu0 %v251_v31, %s735_s0  ;;  %s761_s0 = smov 71   ;;  %v491_v0 = vld [vmem:[#allocation0] sm:$0x3]  }
  0x47   :  { %260 = vrot.lane.b32.xlu1 %v259_v32, %s736_s8  ;;  %s762_s8 = smov 70   ;;  %v499_v1 = vld [vmem:[#allocation0] sm:$0x3]  }
  0x48   :  { %v507_v4 = vld [vmem:[#allocation0] sm:$0x3]  }
  0x4a   :  { %268 = vrot.lane.b32.xlu0 %v267_v33, %s737_s9 }
  0x4b   :  { %276 = vrot.lane.b32.xlu1 %v275_v34, %s738_s10 }
  0x4e   :  { %284 = vrot.lane.b32.xlu0 %v283_v35, %s739_s11 }
  0x4f   :  { %292 = vrot.lane.b32.xlu1 %v291_v36, %s740_s12 }
  0x52   :  { %300 = vrot.lane.b32.xlu0 %v299_v37, %s741_s13 }
  0x53   :  { %308 = vrot.lane.b32.xlu1 %v307_v38, %s742_s14 }
  0x56   :  { %316 = vrot.lane.b32.xlu0 %v315_v39, %s743_s15 }
  0x57   :  { %324 = vrot.lane.b32.xlu1 %v323_v40, %s744_s16 }
  0x5a   :  { %332 = vrot.lane.b32.xlu0 %v331_v41, %s745_s17  ;;  %s763_s17 = smov 69  }
  0x5b   :  { %340 = vrot.lane.b32.xlu1 %v339_v42, %s746_s18  ;;  %s764_s18 = smov 68  }
  0x5e   :  { %348 = vrot.lane.b32.xlu0 %v347_v43, %s747_s19 }
  0x5f   :  { %356 = vrot.lane.b32.xlu1 %v355_v44, %s748_s20 }
  0x62   :  { %364 = vrot.lane.b32.xlu0 %v363_v45, %s749_s21 }
  0x63   :  { %372 = vrot.lane.b32.xlu1 %v371_v46, %s750_s22 }
  0x66   :  { %380 = vrot.lane.b32.xlu0 %v379_v47, %s751_s23 }
  0x67   :  { %388 = vrot.lane.b32.xlu1 %v387_v48, %s752_s24 }
  0x6a   :  { %396 = vrot.lane.b32.xlu0 %v395_v49, %s753_s25 }
  0x6b   :  { %404 = vrot.lane.b32.xlu1 %v403_v50, %s754_s26 }
  0x6e   :  { %412 = vrot.lane.b32.xlu0 %v411_v51, %s755_s27  ;;  %s765_s27 = smov 67  }
  0x6f   :  { %420 = vrot.lane.b32.xlu1 %v419_v52, %s756_s28  ;;  %s766_s28 = smov 66  }
  0x72   :  { %428 = vrot.lane.b32.xlu0 %v427_v53, %s757_s29 }
  0x73   :  { %436 = vrot.lane.b32.xlu1 %v435_v54, %s758_s30 }
  0x76   :  { %444 = vrot.lane.b32.xlu0 %v443_v55, %s759_s2 }
  0x77   :  { %452 = vrot.lane.b32.xlu1 %v451_v56, %s760_s3 }
  0x7a   :  { %460 = vrot.lane.b32.xlu0 %v459_v57, %s761_s0  ;;  %s767_s0 = smov 65  }
  0x7b   :  { %468 = vrot.lane.b32.xlu1 %v467_v58, %s762_s8 }
  0x7c   :  { %v13_v62 = vpop.permute.xlu0 %12  }
  0x7d   :  { %v29_v63 = vpop.permute.xlu1 %28   ;;  %516 = vst.msk [vmem:[%s1294_s1 + $0x1] sm:$0x1] %vm7_vm0, %v13_v62   ;;  %517 = vst.msk [vmem:[%s1294_s1 + $0x40] sm:$0x2] %vm7_vm0, %v13_v62  }
  0x7e   :  { %520 = vst.msk [vmem:[%s1294_s1 + $0x3] sm:$0x1] %vm7_vm0, %v29_v63   ;;  %521 = vst.msk [vmem:[%s1294_s1 + $0x42] sm:$0x2] %vm7_vm0, %v29_v63   ;;  %476 = vrot.lane.b32.xlu0 %v475_v60, %s763_s17 }
  0x7f   :  { %484 = vrot.lane.b32.xlu1 %v483_v61, %s764_s18 }
  0x80   :  { %v21_v2 = vpop.permute.xlu0 %20  }
  0x81   :  { %v37_v3 = vpop.permute.xlu1 %36   ;;  %518 = vst.msk [vmem:[%s1294_s1 + $0x2] sm:$0x1] %vm7_vm0, %v21_v2   ;;  %519 = vst.msk [vmem:[%s1294_s1 + $0x41] sm:$0x2] %vm7_vm0, %v21_v2  }
  0x82   :  { %522 = vst.msk [vmem:[%s1294_s1 + $0x4] sm:$0x1] %vm7_vm0, %v37_v3   ;;  %523 = vst.msk [vmem:[%s1294_s1 + $0x43] sm:$0x2] %vm7_vm0, %v37_v3   ;;  %492 = vrot.lane.b32.xlu0 %v491_v0, %s765_s27 }
  0x83   :  { %500 = vrot.lane.b32.xlu1 %v499_v1, %s766_s28 }
  0x84   :  { %v45_v5 = vpop.permute.xlu0 %44  }
  0x85   :  { %v53_v6 = vpop.permute.xlu1 %52   ;;  %524 = vst.msk [vmem:[%s1294_s1 + $0x5] sm:$0x1] %vm7_vm0, %v45_v5   ;;  %525 = vst.msk [vmem:[%s1294_s1 + $0x44] sm:$0x2] %vm7_vm0, %v45_v5  }
  0x86   :  { %526 = vst.msk [vmem:[%s1294_s1 + $0x6] sm:$0x1] %vm7_vm0, %v53_v6   ;;  %527 = vst.msk [vmem:[%s1294_s1 + $0x45] sm:$0x2] %vm7_vm0, %v53_v6   ;;  %508 = vrot.lane.b32.xlu0 %v507_v4, %s767_s0 }
  0x88   :  { %v61_v7 = vpop.permute.xlu0 %60  }
  0x89   :  { %v69_v8 = vpop.permute.xlu1 %68   ;;  %528 = vst.msk [vmem:[%s1294_s1 + $0x7] sm:$0x1] %vm7_vm0, %v61_v7   ;;  %529 = vst.msk [vmem:[%s1294_s1 + $0x46] sm:$0x2] %vm7_vm0, %v61_v7  }
  0x8a   :  { %530 = vst.msk [vmem:[%s1294_s1 + $0x8] sm:$0x1] %vm7_vm0, %v69_v8   ;;  %531 = vst.msk [vmem:[%s1294_s1 + $0x47] sm:$0x2] %vm7_vm0, %v69_v8  }
  0x8c   :  { %v77_v9 = vpop.permute.xlu0 %76  }
  0x8d   :  { %v85_v10 = vpop.permute.xlu1 %84   ;;  %532 = vst.msk [vmem:[%s1294_s1 + $0x9] sm:$0x1] %vm7_vm0, %v77_v9   ;;  %533 = vst.msk [vmem:[%s1294_s1 + $0x48] sm:$0x2] %vm7_vm0, %v77_v9  }
  0x8e   :  { %534 = vst.msk [vmem:[%s1294_s1 + $0xa] sm:$0x1] %vm7_vm0, %v85_v10   ;;  %535 = vst.msk [vmem:[%s1294_s1 + $0x49] sm:$0x2] %vm7_vm0, %v85_v10  }
  0x90   :  { %v93_v11 = vpop.permute.xlu0 %92  }
  0x91   :  { %v101_v12 = vpop.permute.xlu1 %100   ;;  %536 = vst.msk [vmem:[%s1294_s1 + $0xb] sm:$0x1] %vm7_vm0, %v93_v11   ;;  %537 = vst.msk [vmem:[%s1294_s1 + $0x4a] sm:$0x2] %vm7_vm0, %v93_v11  }
  0x92   :  { %538 = vst.msk [vmem:[%s1294_s1 + $0xc] sm:$0x1] %vm7_vm0, %v101_v12   ;;  %539 = vst.msk [vmem:[%s1294_s1 + $0x4b] sm:$0x2] %vm7_vm0, %v101_v12  }
  0x94   :  { %v109_v13 = vpop.permute.xlu0 %108  }
  0x95   :  { %v117_v14 = vpop.permute.xlu1 %116   ;;  %540 = vst.msk [vmem:[%s1294_s1 + $0xd] sm:$0x1] %vm7_vm0, %v109_v13   ;;  %541 = vst.msk [vmem:[%s1294_s1 + $0x4c] sm:$0x2] %vm7_vm0, %v109_v13  }
  0x96   :  { %542 = vst.msk [vmem:[%s1294_s1 + $0xe] sm:$0x1] %vm7_vm0, %v117_v14   ;;  %543 = vst.msk [vmem:[%s1294_s1 + $0x4d] sm:$0x2] %vm7_vm0, %v117_v14  }
  0x98   :  { %v125_v15 = vpop.permute.xlu0 %124  }
  0x99   :  { %v133_v16 = vpop.permute.xlu1 %132   ;;  %544 = vst.msk [vmem:[%s1294_s1 + $0xf] sm:$0x1] %vm7_vm0, %v125_v15   ;;  %545 = vst.msk [vmem:[%s1294_s1 + $0x4e] sm:$0x2] %vm7_vm0, %v125_v15  }
  0x9a   :  { %546 = vst.msk [vmem:[%s1294_s1 + $0x10] sm:$0x1] %vm7_vm0, %v133_v16   ;;  %547 = vst.msk [vmem:[%s1294_s1 + $0x4f] sm:$0x2] %vm7_vm0, %v133_v16  }
  0x9c   :  { %v141_v17 = vpop.permute.xlu0 %140  }
  0x9d   :  { %v149_v18 = vpop.permute.xlu1 %148   ;;  %548 = vst.msk [vmem:[%s1294_s1 + $0x11] sm:$0x1] %vm7_vm0, %v141_v17   ;;  %549 = vst.msk [vmem:[%s1294_s1 + $0x50] sm:$0x2] %vm7_vm0, %v141_v17  }
  0x9e   :  { %550 = vst.msk [vmem:[%s1294_s1 + $0x12] sm:$0x1] %vm7_vm0, %v149_v18   ;;  %551 = vst.msk [vmem:[%s1294_s1 + $0x51] sm:$0x2] %vm7_vm0, %v149_v18  }
  0xa0   :  { %v157_v19 = vpop.permute.xlu0 %156  }
  0xa1   :  { %v165_v20 = vpop.permute.xlu1 %164   ;;  %552 = vst.msk [vmem:[%s1294_s1 + $0x13] sm:$0x1] %vm7_vm0, %v157_v19   ;;  %553 = vst.msk [vmem:[%s1294_s1 + $0x52] sm:$0x2] %vm7_vm0, %v157_v19  }
  0xa2   :  { %554 = vst.msk [vmem:[%s1294_s1 + $0x14] sm:$0x1] %vm7_vm0, %v165_v20   ;;  %555 = vst.msk [vmem:[%s1294_s1 + $0x53] sm:$0x2] %vm7_vm0, %v165_v20  }
  0xa4   :  { %v173_v21 = vpop.permute.xlu0 %172  }
  0xa5   :  { %v181_v22 = vpop.permute.xlu1 %180   ;;  %556 = vst.msk [vmem:[%s1294_s1 + $0x15] sm:$0x1] %vm7_vm0, %v173_v21   ;;  %557 = vst.msk [vmem:[%s1294_s1 + $0x54] sm:$0x2] %vm7_vm0, %v173_v21  }
  0xa6   :  { %558 = vst.msk [vmem:[%s1294_s1 + $0x16] sm:$0x1] %vm7_vm0, %v181_v22   ;;  %559 = vst.msk [vmem:[%s1294_s1 + $0x55] sm:$0x2] %vm7_vm0, %v181_v22  }
  0xa8   :  { %v189_v23 = vpop.permute.xlu0 %188  }
  0xa9   :  { %v197_v24 = vpop.permute.xlu1 %196   ;;  %560 = vst.msk [vmem:[%s1294_s1 + $0x17] sm:$0x1] %vm7_vm0, %v189_v23   ;;  %561 = vst.msk [vmem:[%s1294_s1 + $0x56] sm:$0x2] %vm7_vm0, %v189_v23  }
  0xaa   :  { %562 = vst.msk [vmem:[%s1294_s1 + $0x18] sm:$0x1] %vm7_vm0, %v197_v24   ;;  %563 = vst.msk [vmem:[%s1294_s1 + $0x57] sm:$0x2] %vm7_vm0, %v197_v24  }
  0xac   :  { %v205_v25 = vpop.permute.xlu0 %204  }
  0xad   :  { %v213_v26 = vpop.permute.xlu1 %212   ;;  %564 = vst.msk [vmem:[%s1294_s1 + $0x19] sm:$0x1] %vm7_vm0, %v205_v25   ;;  %565 = vst.msk [vmem:[%s1294_s1 + $0x58] sm:$0x2] %vm7_vm0, %v205_v25  }
  0xae   :  { %566 = vst.msk [vmem:[%s1294_s1 + $0x1a] sm:$0x1] %vm7_vm0, %v213_v26   ;;  %567 = vst.msk [vmem:[%s1294_s1 + $0x59] sm:$0x2] %vm7_vm0, %v213_v26  }
  0xb0   :  { %v221_v27 = vpop.permute.xlu0 %220  }
  0xb1   :  { %v229_v28 = vpop.permute.xlu1 %228   ;;  %568 = vst.msk [vmem:[%s1294_s1 + $0x1b] sm:$0x1] %vm7_vm0, %v221_v27   ;;  %569 = vst.msk [vmem:[%s1294_s1 + $0x5a] sm:$0x2] %vm7_vm0, %v221_v27  }
  0xb2   :  { %570 = vst.msk [vmem:[%s1294_s1 + $0x1c] sm:$0x1] %vm7_vm0, %v229_v28   ;;  %571 = vst.msk [vmem:[%s1294_s1 + $0x5b] sm:$0x2] %vm7_vm0, %v229_v28  }
  0xb4   :  { %v237_v29 = vpop.permute.xlu0 %236  }
  0xb5   :  { %v245_v30 = vpop.permute.xlu1 %244   ;;  %572 = vst.msk [vmem:[%s1294_s1 + $0x1d] sm:$0x1] %vm7_vm0, %v237_v29   ;;  %573 = vst.msk [vmem:[%s1294_s1 + $0x5c] sm:$0x2] %vm7_vm0, %v237_v29  }
  0xb6   :  { %574 = vst.msk [vmem:[%s1294_s1 + $0x1e] sm:$0x1] %vm7_vm0, %v245_v30   ;;  %575 = vst.msk [vmem:[%s1294_s1 + $0x5d] sm:$0x2] %vm7_vm0, %v245_v30  }
  0xb8   :  { %v253_v31 = vpop.permute.xlu0 %252  }
  0xb9   :  { %v261_v32 = vpop.permute.xlu1 %260   ;;  %576 = vst.msk [vmem:[%s1294_s1 + $0x1f] sm:$0x1] %vm7_vm0, %v253_v31   ;;  %577 = vst.msk [vmem:[%s1294_s1 + $0x5e] sm:$0x2] %vm7_vm0, %v253_v31  }
  0xba   :  { %578 = vst.msk [vmem:[%s1294_s1 + $0x20] sm:$0x1] %vm7_vm0, %v261_v32   ;;  %579 = vst.msk [vmem:[%s1294_s1 + $0x5f] sm:$0x2] %vm7_vm0, %v261_v32  }
  0xbc   :  { %v269_v33 = vpop.permute.xlu0 %268  }
  0xbd   :  { %v277_v34 = vpop.permute.xlu1 %276   ;;  %580 = vst.msk [vmem:[%s1294_s1 + $0x21] sm:$0x1] %vm7_vm0, %v269_v33   ;;  %581 = vst.msk [vmem:[%s1294_s1 + $0x60] sm:$0x2] %vm7_vm0, %v269_v33  }
  0xbe   :  { %582 = vst.msk [vmem:[%s1294_s1 + $0x22] sm:$0x1] %vm7_vm0, %v277_v34   ;;  %583 = vst.msk [vmem:[%s1294_s1 + $0x61] sm:$0x2] %vm7_vm0, %v277_v34  }
  0xc0   :  { %v285_v35 = vpop.permute.xlu0 %284  }
  0xc1   :  { %v293_v36 = vpop.permute.xlu1 %292   ;;  %584 = vst.msk [vmem:[%s1294_s1 + $0x23] sm:$0x1] %vm7_vm0, %v285_v35   ;;  %585 = vst.msk [vmem:[%s1294_s1 + $0x62] sm:$0x2] %vm7_vm0, %v285_v35  }
  0xc2   :  { %586 = vst.msk [vmem:[%s1294_s1 + $0x24] sm:$0x1] %vm7_vm0, %v293_v36   ;;  %587 = vst.msk [vmem:[%s1294_s1 + $0x63] sm:$0x2] %vm7_vm0, %v293_v36  }
  0xc4   :  { %v301_v37 = vpop.permute.xlu0 %300  }
  0xc5   :  { %v309_v38 = vpop.permute.xlu1 %308   ;;  %588 = vst.msk [vmem:[%s1294_s1 + $0x25] sm:$0x1] %vm7_vm0, %v301_v37   ;;  %589 = vst.msk [vmem:[%s1294_s1 + $0x64] sm:$0x2] %vm7_vm0, %v301_v37  }
  0xc6   :  { %590 = vst.msk [vmem:[%s1294_s1 + $0x26] sm:$0x1] %vm7_vm0, %v309_v38   ;;  %591 = vst.msk [vmem:[%s1294_s1 + $0x65] sm:$0x2] %vm7_vm0, %v309_v38  }
  0xc8   :  { %v317_v39 = vpop.permute.xlu0 %316  }
  0xc9   :  { %v325_v40 = vpop.permute.xlu1 %324   ;;  %592 = vst.msk [vmem:[%s1294_s1 + $0x27] sm:$0x1] %vm7_vm0, %v317_v39   ;;  %593 = vst.msk [vmem:[%s1294_s1 + $0x66] sm:$0x2] %vm7_vm0, %v317_v39  }
  0xca   :  { %594 = vst.msk [vmem:[%s1294_s1 + $0x28] sm:$0x1] %vm7_vm0, %v325_v40   ;;  %595 = vst.msk [vmem:[%s1294_s1 + $0x67] sm:$0x2] %vm7_vm0, %v325_v40  }
  0xcc   :  { %v333_v41 = vpop.permute.xlu0 %332  }
  0xcd   :  { %v341_v42 = vpop.permute.xlu1 %340   ;;  %596 = vst.msk [vmem:[%s1294_s1 + $0x29] sm:$0x1] %vm7_vm0, %v333_v41   ;;  %597 = vst.msk [vmem:[%s1294_s1 + $0x68] sm:$0x2] %vm7_vm0, %v333_v41  }
  0xce   :  { %598 = vst.msk [vmem:[%s1294_s1 + $0x2a] sm:$0x1] %vm7_vm0, %v341_v42   ;;  %599 = vst.msk [vmem:[%s1294_s1 + $0x69] sm:$0x2] %vm7_vm0, %v341_v42  }
  0xd0   :  { %v349_v43 = vpop.permute.xlu0 %348  }
  0xd1   :  { %v357_v44 = vpop.permute.xlu1 %356   ;;  %600 = vst.msk [vmem:[%s1294_s1 + $0x2b] sm:$0x1] %vm7_vm0, %v349_v43   ;;  %601 = vst.msk [vmem:[%s1294_s1 + $0x6a] sm:$0x2] %vm7_vm0, %v349_v43  }
  0xd2   :  { %602 = vst.msk [vmem:[%s1294_s1 + $0x2c] sm:$0x1] %vm7_vm0, %v357_v44   ;;  %603 = vst.msk [vmem:[%s1294_s1 + $0x6b] sm:$0x2] %vm7_vm0, %v357_v44  }
  0xd4   :  { %v365_v45 = vpop.permute.xlu0 %364  }
  0xd5   :  { %v373_v46 = vpop.permute.xlu1 %372   ;;  %604 = vst.msk [vmem:[%s1294_s1 + $0x2d] sm:$0x1] %vm7_vm0, %v365_v45   ;;  %605 = vst.msk [vmem:[%s1294_s1 + $0x6c] sm:$0x2] %vm7_vm0, %v365_v45  }
  0xd6   :  { %606 = vst.msk [vmem:[%s1294_s1 + $0x2e] sm:$0x1] %vm7_vm0, %v373_v46   ;;  %607 = vst.msk [vmem:[%s1294_s1 + $0x6d] sm:$0x2] %vm7_vm0, %v373_v46  }
  0xd8   :  { %v381_v47 = vpop.permute.xlu0 %380  }
  0xd9   :  { %v389_v48 = vpop.permute.xlu1 %388   ;;  %608 = vst.msk [vmem:[%s1294_s1 + $0x2f] sm:$0x1] %vm7_vm0, %v381_v47   ;;  %609 = vst.msk [vmem:[%s1294_s1 + $0x6e] sm:$0x2] %vm7_vm0, %v381_v47  }
  0xda   :  { %610 = vst.msk [vmem:[%s1294_s1 + $0x30] sm:$0x1] %vm7_vm0, %v389_v48   ;;  %611 = vst.msk [vmem:[%s1294_s1 + $0x6f] sm:$0x2] %vm7_vm0, %v389_v48  }
  0xdc   :  { %v397_v49 = vpop.permute.xlu0 %396  }
  0xdd   :  { %v405_v50 = vpop.permute.xlu1 %404   ;;  %612 = vst.msk [vmem:[%s1294_s1 + $0x31] sm:$0x1] %vm7_vm0, %v397_v49   ;;  %613 = vst.msk [vmem:[%s1294_s1 + $0x70] sm:$0x2] %vm7_vm0, %v397_v49  }
  0xde   :  { %614 = vst.msk [vmem:[%s1294_s1 + $0x32] sm:$0x1] %vm7_vm0, %v405_v50   ;;  %615 = vst.msk [vmem:[%s1294_s1 + $0x71] sm:$0x2] %vm7_vm0, %v405_v50  }
  0xe0   :  { %v413_v51 = vpop.permute.xlu0 %412  }
  0xe1   :  { %v421_v52 = vpop.permute.xlu1 %420   ;;  %616 = vst.msk [vmem:[%s1294_s1 + $0x33] sm:$0x1] %vm7_vm0, %v413_v51   ;;  %617 = vst.msk [vmem:[%s1294_s1 + $0x72] sm:$0x2] %vm7_vm0, %v413_v51  }
  0xe2   :  { %618 = vst.msk [vmem:[%s1294_s1 + $0x34] sm:$0x1] %vm7_vm0, %v421_v52   ;;  %619 = vst.msk [vmem:[%s1294_s1 + $0x73] sm:$0x2] %vm7_vm0, %v421_v52  }
  0xe4   :  { %v429_v53 = vpop.permute.xlu0 %428  }
  0xe5   :  { %v437_v54 = vpop.permute.xlu1 %436   ;;  %620 = vst.msk [vmem:[%s1294_s1 + $0x35] sm:$0x1] %vm7_vm0, %v429_v53   ;;  %621 = vst.msk [vmem:[%s1294_s1 + $0x74] sm:$0x2] %vm7_vm0, %v429_v53  }
  0xe6   :  { %622 = vst.msk [vmem:[%s1294_s1 + $0x36] sm:$0x1] %vm7_vm0, %v437_v54   ;;  %623 = vst.msk [vmem:[%s1294_s1 + $0x75] sm:$0x2] %vm7_vm0, %v437_v54  }
  0xe8   :  { %v445_v55 = vpop.permute.xlu0 %444  }
  0xe9   :  { %v453_v56 = vpop.permute.xlu1 %452   ;;  %624 = vst.msk [vmem:[%s1294_s1 + $0x37] sm:$0x1] %vm7_vm0, %v445_v55   ;;  %625 = vst.msk [vmem:[%s1294_s1 + $0x76] sm:$0x2] %vm7_vm0, %v445_v55  }
  0xea   :  { %626 = vst.msk [vmem:[%s1294_s1 + $0x38] sm:$0x1] %vm7_vm0, %v453_v56   ;;  %627 = vst.msk [vmem:[%s1294_s1 + $0x77] sm:$0x2] %vm7_vm0, %v453_v56  }
  0xec   :  { %v461_v57 = vpop.permute.xlu0 %460  }
  0xed   :  { %v469_v58 = vpop.permute.xlu1 %468   ;;  %628 = vst.msk [vmem:[%s1294_s1 + $0x39] sm:$0x1] %vm7_vm0, %v461_v57   ;;  %629 = vst.msk [vmem:[%s1294_s1 + $0x78] sm:$0x2] %vm7_vm0, %v461_v57  }
  0xee   :  { %630 = vst.msk [vmem:[%s1294_s1 + $0x3a] sm:$0x1] %vm7_vm0, %v469_v58   ;;  %631 = vst.msk [vmem:[%s1294_s1 + $0x79] sm:$0x2] %vm7_vm0, %v469_v58  }
  0xf0   :  { %v477_v59 = vpop.permute.xlu0 %476  }
  0xf1   :  { %v485_v60 = vpop.permute.xlu1 %484   ;;  %632 = vst.msk [vmem:[%s1294_s1 + $0x3b] sm:$0x1] %vm7_vm0, %v477_v59   ;;  %633 = vst.msk [vmem:[%s1294_s1 + $0x7a] sm:$0x2] %vm7_vm0, %v477_v59  }
  0xf2   :  { %634 = vst.msk [vmem:[%s1294_s1 + $0x3c] sm:$0x1] %vm7_vm0, %v485_v60   ;;  %635 = vst.msk [vmem:[%s1294_s1 + $0x7b] sm:$0x2] %vm7_vm0, %v485_v60  }
  0xf4   :  { %v493_v61 = vpop.permute.xlu0 %492  }
  0xf5   :  { %v501_v62 = vpop.permute.xlu1 %500   ;;  %636 = vst.msk [vmem:[%s1294_s1 + $0x3d] sm:$0x1] %vm7_vm0, %v493_v61   ;;  %637 = vst.msk [vmem:[%s1294_s1 + $0x7c] sm:$0x2] %vm7_vm0, %v493_v61  }
  0xf6   :  { %638 = vst.msk [vmem:[%s1294_s1 + $0x3e] sm:$0x1] %vm7_vm0, %v501_v62   ;;  %639 = vst.msk [vmem:[%s1294_s1 + $0x7d] sm:$0x2] %vm7_vm0, %v501_v62  }
  0xf8   :  { %v509_v63 = vpop.permute.xlu0 %508  }
  0xf9   :  { %640 = vst.msk [vmem:[%s1294_s1 + $0x3f] sm:$0x1] %vm7_vm0, %v509_v63   ;;  %641 = vst.msk [vmem:[%s1294_s1 + $0x7e] sm:$0x2] %vm7_vm0, %v509_v63  }

// kernel: critic_forward.1
= control target key start
LH: loop header
LB: loop body
LE: loop exit
PB: predicated region body
PF: predicated region fallthrough
CT: control target
= control target key end

     0   :  { %vm198_vm0 = vcmask 261120   ;;  %v647_v3 = vmov 0   ;;  %vm498_vm1 = vcmask 1040384   ;;  %s902_s0 = inlined_call_operand.vmem [shape: f32[128,32], index: 0, kind: input, shape index: {}]   ;;  %s903_s2 = inlined_call_operand.vmem [shape: f32[128,1], index: 2, kind: input, shape index: {}]   ;;  %s904_s1 = inlined_call_operand.vmem [shape: bf16[128,32], index: 1, kind: input, shape index: {}]   ;;  %s905_s3 = inlined_call_operand.vmem [shape: f32[128,1], index: 3, kind: input, shape index: {}]   ;;  %s906_s4 = inlined_call_operand.<no memory space> [shape: f32[1], index: 4, kind: input, shape index: {}]   ;;  %s907_s5 = inlined_call_operand.vmem [shape: f32[2,128], index: 5, kind: output, shape index: {}]  }
   0x1   :  { %v22_v0 = vld [vmem:[%s902_s0] sm:$0xff]  ;;  %v23_v1 = vld [vmem:[%s902_s0 + $0x8] sm:$0xff]  ;;  %v24_v2 = vld [vmem:[%s902_s0 + $0x10] sm:$0xff]  ;;  %606 = vset.pattern.permute.xlu1 %v647_v3  ;;  %605 = vset.pattern.permute.xlu0 %v647_v3 }
   0x2   :  { %v38_v4 = vpack.c.bf16 %v23_v1, %v22_v0  ;;  %v25_v5 = vld [vmem:[%s902_s0 + $0x18] sm:$0xff]  ;;  %v64_v8 = vld [vmem:[%s903_s2 + $0x10] sm:$0xff]  ;;  %v26_v9 = vld [vmem:[%s902_s0 + $0x20] sm:$0xff] }
   0x3   :  { %v39_v6 = vpack.c.bf16 %v25_v5, %v24_v2  ;;  %v27_v10 = vld [vmem:[%s902_s0 + $0x28] sm:$0xff]  ;;  %v62_v11 = vld [vmem:[%s903_s2] sm:$0xff]  ;;  %90 = vperm.xlu1 %606, %v64_v8   ;;  %v65_v12 = vld [vmem:[%s903_s2 + $0x18] sm:$0xff] }
   0x4   :  { %588 = vmatprep.subr.msk.bf16.mxu0 %vm198_vm0, %v38_v4  ;;  %589 = vmatprep.subr.msk.bf16.mxu1 %vm198_vm0, %v38_v4  ;;  %v224_v7 = vsel %vm198_vm0, %v38_v4, 0  ;;  %v63_v13 = vld [vmem:[%s903_s2 + $0x8] sm:$0xff]  ;;  %v607_v14 = vld [vmem:[%s904_s1] sm:$0xff]   ;;  %v40_v17 = vpack.c.bf16 %v27_v10, %v26_v9  ;;  %v28_v20 = vld [vmem:[%s902_s0 + $0x30] sm:$0xff] }
   0x5   :  { %541 = vmatpush3.bf16.xpose.msra.mxu0 %v224_v7  ;;  %580 = vmatpush3.bf16.xpose.msra.mxu1 %v224_v7  ;;  %v608_v15 = vld [vmem:[%s904_s1 + $0x20] sm:$0xff]   ;;  %v227_v16 = vsel %vm198_vm0, %v39_v6, 0  ;;  %v29_v21 = vld [vmem:[%s902_s0 + $0x38] sm:$0xff]  ;;  %v72_v22 = vld [vmem:[%s903_s2 + $0x50] sm:$0xff] }
   0x6   :  { %590 = vmatprep.subr.msk.bf16.mxu0 %vm198_vm0, %v39_v6  ;;  %591 = vmatprep.subr.msk.bf16.mxu1 %vm198_vm0, %v39_v6  ;;  %v70_v18 = vld [vmem:[%s903_s2 + $0x40] sm:$0xff]  ;;  %v71_v23 = vld [vmem:[%s903_s2 + $0x48] sm:$0xff]  ;;  %v230_v24 = vsel %vm198_vm0, %v40_v17, 0  ;;  %v41_v25 = vpack.c.bf16 %v29_v21, %v28_v20  ;;  %v73_v27 = vld [vmem:[%s903_s2 + $0x58] sm:$0xff] }
   0x7   :  { %80 = vperm.xlu0 %605, %v62_v11   ;;  %556 = vmatprep.mubr.msk.bf16.mxu0 %vm198_vm0, %v607_v14  ;;  %v66_v19 = vld [vmem:[%s903_s2 + $0x20] sm:$0xff]  ;;  %v31_v29 = vld [vmem:[%s902_s0 + $0x48] sm:$0xff]  ;;  %v76_v34 = vld [vmem:[%s903_s2 + $0x70] sm:$0xff] }
   0x8   :  { %95 = vperm.xlu1 %606, %v65_v12   ;;  %564 = vmatprep.mubr.msk.bf16.mxu1 %vm198_vm0, %v608_v15  ;;  %v74_v26 = vld [vmem:[%s903_s2 + $0x60] sm:$0xff]  ;;  %v75_v30 = vld [vmem:[%s903_s2 + $0x68] sm:$0xff]  ;;  %v233_v32 = vsel %vm198_vm0, %v41_v25, 0  ;;  %v68_v35 = vld [vmem:[%s903_s2 + $0x30] sm:$0xff] }
   0x9   :  { %v30_v28 = vld [vmem:[%s902_s0 + $0x40] sm:$0xff]  ;;  %v67_v31 = vld [vmem:[%s903_s2 + $0x28] sm:$0xff]  ;;  %v32_v36 = vld [vmem:[%s902_s0 + $0x50] sm:$0xff] }
   0xa   :  { %v42_v33 = vpack.c.bf16 %v31_v29, %v30_v28  ;;  %v33_v37 = vld [vmem:[%s902_s0 + $0x58] sm:$0xff]  ;;  %v361_v42 = vld [vmem:[%s905_s3 + $0x8] sm:$0xff]  ;;  %v360_v43 = vld [vmem:[%s905_s3] sm:$0xff] }
   0xb   :  { %85 = vperm.xlu0 %605, %v63_v13   ;;  %v77_v38 = vld [vmem:[%s903_s2 + $0x78] sm:$0xff]  ;;  %v43_v41 = vpack.c.bf16 %v33_v37, %v32_v36  ;;  %v34_v44 = vld [vmem:[%s902_s0 + $0x60] sm:$0xff]  ;;  %v35_v45 = vld [vmem:[%s902_s0 + $0x68] sm:$0xff] }
   0xc   :  { %120 = vperm.xlu1 %606, %v70_v18   ;;  %v69_v39 = vld [vmem:[%s903_s2 + $0x38] sm:$0xff]  ;;  %v236_v40 = vsel %vm198_vm0, %v42_v33, 0  ;;  %v369_v46 = vld [vmem:[%s905_s3 + $0x48] sm:$0xff]  ;;  %v368_v47 = vld [vmem:[%s905_s3 + $0x40] sm:$0xff]  ;;  %v44_v49 = vpack.c.bf16 %v35_v45, %v34_v44 }
   0xd   :  { %543 = vmatpush3.bf16.xpose.msra.mxu0 %v227_v16  ;;  %581 = vmatpush3.bf16.xpose.msra.mxu1 %v227_v16  ;;  %v239_v48 = vsel %vm198_vm0, %v43_v41, 0  ;;  %v370_v50 = vld [vmem:[%s905_s3 + $0x50] sm:$0xff]  ;;  %v37_v53 = vld [vmem:[%s902_s0 + $0x78] sm:$0xff]  ;;  %v372_v58 = vld [vmem:[%s905_s3 + $0x60] sm:$0xff] }
   0xe   :  { %592 = vmatprep.subr.msk.bf16.mxu0 %vm198_vm0, %v40_v17  ;;  %593 = vmatprep.subr.msk.bf16.mxu1 %vm198_vm0, %v40_v17  ;;  %v362_v51 = vld [vmem:[%s905_s3 + $0x10] sm:$0xff]  ;;  %v371_v54 = vld [vmem:[%s905_s3 + $0x58] sm:$0xff]  ;;  %v242_v56 = vsel %vm198_vm0, %v44_v49, 0  ;;  %v364_v59 = vld [vmem:[%s905_s3 + $0x20] sm:$0xff] }
   0xf   :  { %100 = vperm.xlu0 %605, %v66_v19   ;;  %v36_v52 = vld [vmem:[%s902_s0 + $0x70] sm:$0xff]  ;;  %v363_v55 = vld [vmem:[%s905_s3 + $0x18] sm:$0xff]  ;;  %v373_v60 = vld [vmem:[%s905_s3 + $0x68] sm:$0xff] }
  0x10   :  { %130 = vperm.xlu1 %606, %v72_v22   ;;  %v45_v57 = vpack.c.bf16 %v37_v53, %v36_v52  ;;  %v365_v61 = vld [vmem:[%s905_s3 + $0x28] sm:$0xff]  ;;  %v374_v63 = vld [vmem:[%s905_s3 + $0x70] sm:$0xff]  ;;  %v375_v3 = vld [vmem:[%s905_s3 + $0x78] sm:$0xff] }
  0x11   :  { %v366_v0 = vld [vmem:[%s905_s3 + $0x30] sm:$0xff]  ;;  %v609_v1 = vld [vmem:[%s904_s1 + $0x8] sm:$0xff]   ;;  %v367_v4 = vld [vmem:[%s905_s3 + $0x38] sm:$0xff] }
  0x12   :  { %v245_v62 = vsel %vm198_vm0, %v45_v57, 0  ;;  %v610_v2 = vld [vmem:[%s904_s1 + $0x28] sm:$0xff]   ;;  %v611_v5 = vld [vmem:[%s904_s1 + $0x10] sm:$0xff]   ;;  %v613_v7 = vld [vmem:[%s904_s1 + $0x18] sm:$0xff]  }
  0x13   :  { %125 = vperm.xlu0 %605, %v71_v23   ;;  %v612_v6 = vld [vmem:[%s904_s1 + $0x30] sm:$0xff]   ;;  %v614_v8 = vld [vmem:[%s904_s1 + $0x38] sm:$0xff]  }
  0x14   :  { %140 = vperm.xlu1 %606, %v74_v26  }
  0x15   :  { %545 = vmatpush3.bf16.xpose.msra.mxu0 %v230_v24  ;;  %582 = vmatpush3.bf16.xpose.msra.mxu1 %v230_v24 }
  0x16   :  { %594 = vmatprep.subr.msk.bf16.mxu0 %vm198_vm0, %v41_v25  ;;  %595 = vmatprep.subr.msk.bf16.mxu1 %vm198_vm0, %v41_v25 }
  0x17   :  { %135 = vperm.xlu0 %605, %v73_v27  }
  0x18   :  { %145 = vperm.xlu1 %606, %v75_v30  }
  0x1b   :  { %105 = vperm.xlu0 %605, %v67_v31  }
  0x1c   :  { %150 = vperm.xlu1 %606, %v76_v34  }
  0x1d   :  { %547 = vmatpush3.bf16.xpose.msra.mxu0 %v233_v32  ;;  %583 = vmatpush3.bf16.xpose.msra.mxu1 %v233_v32 }
  0x1e   :  { %596 = vmatprep.subr.msk.bf16.mxu0 %vm198_vm0, %v42_v33  ;;  %597 = vmatprep.subr.msk.bf16.mxu1 %vm198_vm0, %v42_v33 }
  0x1f   :  { %110 = vperm.xlu0 %605, %v68_v35  }
  0x20   :  { %155 = vperm.xlu1 %606, %v77_v38  }
  0x23   :  { %115 = vperm.xlu0 %605, %v69_v39  }
  0x24   :  { %383 = vperm.xlu1 %606, %v361_v42  }
  0x25   :  { %549 = vmatpush3.bf16.xpose.msra.mxu0 %v236_v40  ;;  %584 = vmatpush3.bf16.xpose.msra.mxu1 %v236_v40 }
  0x26   :  { %598 = vmatprep.subr.msk.bf16.mxu0 %vm198_vm0, %v43_v41  ;;  %599 = vmatprep.subr.msk.bf16.mxu1 %vm198_vm0, %v43_v41 }
  0x27   :  { %378 = vperm.xlu0 %605, %v360_v43  }
  0x28   :  { %423 = vperm.xlu1 %606, %v369_v46  }
  0x2b   :  { %418 = vperm.xlu0 %605, %v368_v47  }
  0x2c   :  { %428 = vperm.xlu1 %606, %v370_v50  }
  0x2d   :  { %551 = vmatpush3.bf16.xpose.msra.mxu0 %v239_v48  ;;  %585 = vmatpush3.bf16.xpose.msra.mxu1 %v239_v48 }
  0x2e   :  { %600 = vmatprep.subr.msk.bf16.mxu0 %vm198_vm0, %v44_v49  ;;  %601 = vmatprep.subr.msk.bf16.mxu1 %vm198_vm0, %v44_v49 }
  0x2f   :  { %388 = vperm.xlu0 %605, %v362_v51  }
  0x30   :  { %433 = vperm.xlu1 %606, %v371_v54  }
  0x33   :  { %393 = vperm.xlu0 %605, %v363_v55  }
  0x34   :  { %438 = vperm.xlu1 %606, %v372_v58  }
  0x35   :  { %553 = vmatpush3.bf16.xpose.msra.mxu0 %v242_v56  ;;  %586 = vmatpush3.bf16.xpose.msra.mxu1 %v242_v56 }
  0x36   :  { %602 = vmatprep.subr.msk.bf16.mxu0 %vm198_vm0, %v45_v57  ;;  %603 = vmatprep.subr.msk.bf16.mxu1 %vm198_vm0, %v45_v57 }
  0x37   :  { %398 = vperm.xlu0 %605, %v364_v59  }
  0x38   :  { %443 = vperm.xlu1 %606, %v373_v60  }
  0x3b   :  { %403 = vperm.xlu0 %605, %v365_v61  }
  0x3c   :  { %448 = vperm.xlu1 %606, %v374_v63  }
  0x3d   :  { %555 = vmatpush3.bf16.xpose.msra.mxu0 %v245_v62  ;;  %587 = vmatpush3.bf16.xpose.msra.mxu1 %v245_v62 }
  0x3f   :  { %408 = vperm.xlu0 %605, %v366_v0  }
  0x40   :  { %453 = vperm.xlu1 %606, %v375_v3  }
  0x43   :  { %413 = vperm.xlu0 %605, %v367_v4  }
  0x44   :  { %557 = vmatmul.mubr.msk.bf16.vlgmr.msra.gmra.mrb[0].mxu0 %vm198_vm0, %v609_v1  ;;  %565 = vmatmul.mubr.msk.bf16.vlgmr.msra.gmra.mrb[0].mxu1 %vm198_vm0, %v610_v2 }
  0x45   :  { %560 = vmatprep.mubr.msk.bf16.mxu0 %vm198_vm0, %v611_v5  ;;  %568 = vmatprep.mubr.msk.bf16.mxu1 %vm198_vm0, %v612_v6 }
  0x4c   :  { %561 = vmatmul.mubr.msk.bf16.gmra.mrb[4].mxu0 %vm198_vm0, %v613_v7  ;;  %569 = vmatmul.mubr.msk.bf16.gmra.mrb[4].mxu1 %vm198_vm0, %v614_v8 }
  0x82   :  { %v91_v9 = vpop.permute.xlu1 %90 }
  0x86   :  { %v81_v10 = vpop.permute.xlu0 %80 }
  0x87   :  { %v96_v11 = vpop.permute.xlu1 %95 }
  0x8a   :  { %v86_v12 = vpop.permute.xlu0 %85 }
  0x8b   :  { %v121_v13 = vpop.permute.xlu1 %120 }
  0x8e   :  { %v101_v14 = vpop.permute.xlu0 %100 }
  0x8f   :  { %v131_v15 = vpop.permute.xlu1 %130 }
  0x92   :  { %v126_v16 = vpop.permute.xlu0 %125 }
  0x93   :  { %v141_v17 = vpop.permute.xlu1 %140 }
  0x96   :  { %v136_v18 = vpop.permute.xlu0 %135 }
  0x97   :  { %v146_v19 = vpop.permute.xlu1 %145 }
  0x9a   :  { %v106_v20 = vpop.permute.xlu0 %105 }
  0x9b   :  { %v151_v21 = vpop.permute.xlu1 %150 }
  0x9e   :  { %v111_v22 = vpop.permute.xlu0 %110 }
  0x9f   :  { %v156_v23 = vpop.permute.xlu1 %155 }
  0xa2   :  { %v116_v24 = vpop.permute.xlu0 %115 }
  0xa3   :  { %v878_v25 = vpop.permute.xlu1 %383 }
  0xa6   :  { %v880_v26 = vpop.permute.xlu0 %378 }
  0xa7   :  { %v882_v27 = vpop.permute.xlu1 %423 }
  0xaa   :  { %v884_v28 = vpop.permute.xlu0 %418 }
  0xab   :  { %v886_v29 = vpop.permute.xlu1 %428 }
  0xae   :  { %v888_v30 = vpop.permute.xlu0 %388 }
  0xaf   :  { %v434_v45 = vpop.permute.xlu1 %433 }
  0xb2   :  { %v394_v46 = vpop.permute.xlu0 %393 }
  0xb3   :  { %v439_v63 = vpop.permute.xlu1 %438 }
  0xb6   :  { %v399_v61 = vpop.permute.xlu0 %398 }
  0xba   :  { %v404_v8 = vpop.permute.xlu0 %403 }
 0x117   :  { %v558_v31 = vpop.f32.mrb[0].mxu0  ;;  %v566_v32 = vpop.f32.mrb[0].mxu1 }
 0x118   :  { %v290_v33 = vadd.f32 %v558_v31, %v91_v9  ;;  %v281_v34 = vpop.f32.mrb[1].mxu0  ;;  %v313_v35 = vpop.f32.mrb[1].mxu1  ;;  %v322_v36 = vadd.f32 %v566_v32, %v131_v15 }
 0x119   :  { %v559_v37 = vpop.f32.mrb[2].mxu0  ;;  %v567_v38 = vpop.f32.mrb[2].mxu1  ;;  %v282_v39 = vadd.f32 %v281_v34, %v81_v10  ;;  %v314_v42 = vadd.f32 %v313_v35, %v121_v13 }
 0x11a   :  { %v284_v40 = vpop.f32.mrb[3].mxu0  ;;  %v316_v41 = vpop.f32.mrb[3].mxu1  ;;  %615 = vtanh.f32 %v290_v33  ;;  %v293_v47 = vadd.f32 %v559_v37, %v96_v11  ;;  %v325_v48 = vadd.f32 %v567_v38, %v136_v18 }
 0x11b   :  { %v285_v43 = vadd.f32 %v284_v40, %v86_v12  ;;  %617 = vtanh.f32 %v322_v36  ;;  %v317_v44 = vadd.f32 %v316_v41, %v126_v16  ;;  %v444_v10 = vpop.permute.xlu1 %443 }
 0x11c   :  { %619 = vtanh.f32 %v282_v39 }
 0x11d   :  { %621 = vtanh.f32 %v314_v42 }
 0x11e   :  { %623 = vtanh.f32 %v285_v43 }
 0x11f   :  { %v562_v49 = vpop.f32.mrb[4].mxu0  ;;  %v570_v50 = vpop.f32.mrb[4].mxu1  ;;  %625 = vtanh.f32 %v317_v44 }
 0x120   :  { %v297_v51 = vpop.f32.mrb[5].mxu0  ;;  %v329_v52 = vpop.f32.mrb[5].mxu1  ;;  %627 = vtanh.f32 %v293_v47  ;;  %v306_v57 = vadd.f32 %v562_v49, %v111_v22  ;;  %v338_v60 = vadd.f32 %v570_v50, %v151_v21 }
 0x121   :  { %v298_v53 = vadd.f32 %v297_v51, %v101_v14  ;;  %v330_v54 = vadd.f32 %v329_v52, %v141_v17  ;;  %v563_v55 = vpop.f32.mrb[6].mxu0  ;;  %v571_v56 = vpop.f32.mrb[6].mxu1  ;;  %629 = vtanh.f32 %v325_v48 }
 0x122   :  { %v300_v58 = vpop.f32.mrb[7].mxu0  ;;  %v332_v59 = vpop.f32.mrb[7].mxu1  ;;  %v309_v2 = vadd.f32 %v563_v55, %v116_v24  ;;  %v341_v4 = vadd.f32 %v571_v56, %v156_v23 }
 0x123   :  { %631 = vtanh.f32 %v298_v53  ;;  %v301_v62 = vadd.f32 %v300_v58, %v106_v20  ;;  %v333_v0 = vadd.f32 %v332_v59, %v146_v19  ;;  %v449_v35 = vpop.permute.xlu1 %448 }
 0x124   :  { %633 = vtanh.f32 %v330_v54  ;;  %v616_v1 = vpop.eup %615 }
 0x125   :  { %635 = vtanh.f32 %v306_v57  ;;  %v618_v3 = vpop.eup %617  ;;  %v458_v17 = vmul.f32 %v616_v1, %v888_v30 }
 0x126   :  { %637 = vtanh.f32 %v338_v60  ;;  %v620_v5 = vpop.eup %619  ;;  %v466_v20 = vmul.f32 %v618_v3, %v886_v29  ;;  %v501_v3 = vstv %s906_s4 }
 0x127   :  { %639 = vtanh.f32 %v301_v62  ;;  %v622_v6 = vpop.eup %621  ;;  %v456_v11 = vmul.f32 %v620_v5, %v880_v26 }
 0x128   :  { %641 = vtanh.f32 %v333_v0  ;;  %v624_v7 = vpop.eup %623  ;;  %v464_v14 = vmul.f32 %v622_v6, %v884_v28 }
 0x129   :  { %643 = vtanh.f32 %v309_v2  ;;  %v626_v9 = vpop.eup %625  ;;  %v457_v12 = vmul.f32 %v624_v7, %v878_v25  ;;  %v409_v25 = vpop.permute.xlu0 %408 }
 0x12a   :  { %645 = vtanh.f32 %v341_v4  ;;  %v628_v13 = vpop.eup %627  ;;  %v465_v15 = vmul.f32 %v626_v9, %v882_v27 }
 0x12b   :  { %v630_v16 = vpop.eup %629  ;;  %v472_v18 = vadd.f32 %v457_v12, %v456_v11  ;;  %v459_v23 = vmul.f32 %v628_v13, %v394_v46 }
 0x12c   :  { %v485_v21 = vadd.f32 %v465_v15, %v464_v14  ;;  %v467_v32 = vmul.f32 %v630_v16, %v434_v45  ;;  %v454_v45 = vpop.permute.xlu1 %453 }
 0x12d   :  { %v632_v19 = vpop.eup %631  ;;  %v473_v24 = vadd.f32 %v472_v18, %v458_v17  ;;  %v414_v46 = vpop.permute.xlu0 %413 }
 0x12e   :  { %v634_v22 = vpop.eup %633  ;;  %v460_v26 = vmul.f32 %v632_v19, %v399_v61  ;;  %v486_v33 = vadd.f32 %v485_v21, %v466_v20 }
 0x12f   :  { %v636_v31 = vpop.eup %635  ;;  %v468_v34 = vmul.f32 %v634_v22, %v439_v63  ;;  %v474_v27 = vadd.f32 %v473_v24, %v459_v23 }
 0x130   :  { %v638_v28 = vpop.eup %637  ;;  %v487_v37 = vadd.f32 %v486_v33, %v467_v32  ;;  %v462_v43 = vmul.f32 %v636_v31, %v409_v25 }
 0x131   :  { %v640_v36 = vpop.eup %639  ;;  %v475_v38 = vadd.f32 %v474_v27, %v460_v26  ;;  %v470_v47 = vmul.f32 %v638_v28, %v449_v35 }
 0x132   :  { %v642_v30 = vpop.eup %641  ;;  %v461_v39 = vmul.f32 %v640_v36, %v404_v8  ;;  %v488_v29 = vadd.f32 %v487_v37, %v468_v34 }
 0x133   :  { %v644_v40 = vpop.eup %643  ;;  %v469_v41 = vmul.f32 %v642_v30, %v444_v10 }
 0x134   :  { %v646_v42 = vpop.eup %645  ;;  %v476_v44 = vadd.f32 %v475_v38, %v461_v39  ;;  %v463_v49 = vmul.f32 %v644_v40, %v414_v46 }
 0x135   :  { %v489_v48 = vadd.f32 %v488_v29, %v469_v41  ;;  %v471_v51 = vmul.f32 %v646_v42, %v454_v45 }
 0x136   :  { %v477_v50 = vadd.f32 %v476_v44, %v462_v43 }
 0x137   :  { %v490_v52 = vadd.f32 %v489_v48, %v470_v47 }
 0x138   :  { %v478_v53 = vadd.f32 %v477_v50, %v463_v49 }
 0x139   :  { %v491_v54 = vadd.f32 %v490_v52, %v471_v51 }
 0x13a   :  { %v479_v55 = vrot.slane %v478_v53, 4 }
 0x13b   :  { %v492_v56 = vrot.slane %v491_v54, 4 }
 0x13c   :  { %v480_v57 = vadd.f32 %v479_v55, %v478_v53 }
 0x13d   :  { %v493_v58 = vadd.f32 %v492_v56, %v491_v54 }
 0x13e   :  { %v481_v59 = vrot.slane %v480_v57, 2 }
 0x13f   :  { %v494_v60 = vrot.slane %v493_v58, 2 }
 0x140   :  { %v482_v61 = vadd.f32 %v481_v59, %v480_v57 }
 0x141   :  { %v495_v62 = vadd.f32 %v494_v60, %v493_v58 }
 0x142   :  { %v483_v63 = vrot.slane %v482_v61, 1 }
 0x143   :  { %v496_v0 = vrot.slane %v495_v62, 1 }
 0x144   :  { %v484_v1 = vadd.f32 %v483_v63, %v482_v61 }
 0x145   :  { %v497_v2 = vadd.f32 %v496_v0, %v495_v62 }
 0x147   :  { %v499_v4 = vsel %vm498_vm1, %v484_v1, %v497_v2 }
 0x148   :  { %v502_v5 = vadd.f32 %v501_v3, %v499_v4 }
 0x14a   :  { %503 = vst [vmem:[%s907_s5] sm:$0x3] %v502_v5 }

</bundles_post_ra>
